<compile_context>
chip_gen: v7x
topology: tpu7x:2x2x1
jax: 0.10.0
libtpu: 0.0.40
codegen_flags: <defaults>
</compile_context>

<pallas_src>
import functools

import jax
import jax.numpy as jnp
from jax.experimental import pallas as pl
from jax.experimental.pallas import tpu as pltpu

EPS = 1e-07


def _loss_kernel(inp_ref, sal_ref, fix_ref, w_ref, out_ref, *,
                 n_total, tm, l_size):
    """One grid step processes a (TM, L) block of rows and writes the block's
    partial loss sum (broadcast over its own (1, 8, 128) output block)."""
    i = pl.program_id(0)

    w = w_ref[...]                        # (1, L), broadcasts over rows
    x = inp_ref[...] * w                  # input * spherical weight
    s = sal_ref[...] * w                  # sal   * spherical weight
    f = fix_ref[...] * w                  # fix   * spherical weight

    inv_Lf = jnp.float32(1.0 / l_size)

    # Row sums used by the normalizers (one reduction each).
    sum_x = jnp.sum(x, axis=-1, keepdims=True)        # (TM, 1)
    sum_s = jnp.sum(s, axis=-1, keepdims=True)
    sum_f = jnp.sum(f, axis=-1, keepdims=True)

    # ---------------- NSS(x, f) ----------------
    mean_x = sum_x * inv_Lf
    diff = x - mean_x                                   # reused below
    # torch.std default is unbiased (divide by L-1)
    var_x = jnp.sum(diff * diff, axis=-1, keepdims=True) * jnp.float32(
        1.0 / (l_size - 1))
    std_x = jnp.sqrt(var_x)
    # Per-row exact reciprocals (cheap: (TM,1) elements) -> per-element multiply.
    inv_std = 1.0 / (std_x + EPS)
    inv_sumf = 1.0 / (sum_f + EPS)
    nss = jnp.sum(diff * f, axis=-1, keepdims=True) * inv_std * inv_sumf

    # --------- probability-normalized maps (shared by KLD and CC) ---------
    inv_sum_x = 1.0 / sum_x
    inv_sum_s = 1.0 / sum_s
    xp = x * inv_sum_x
    sp = s * inv_sum_s

    # ---------------- KLD(x, s) ----------------
    # Note: kept as an exact per-element divide to stay within the 1e-5
    # validation tolerance; the kernel remains HBM-bound with it
    # (an approx EUP reciprocal here would trade ~1e-4 accuracy for little).
    kld = jnp.sum(sp * jnp.log(sp / (xp + EPS) + EPS), axis=-1, keepdims=True)

    # ---------------- CC(x, s) ----------------
    # sum(xp) == sum(sp) == 1 by construction, so those reductions are dropped.
    sum_prod = jnp.sum(xp * sp, axis=-1, keepdims=True)
    sum_x2 = jnp.sum(xp * xp, axis=-1, keepdims=True)
    sum_y2 = jnp.sum(sp * sp, axis=-1, keepdims=True)
    num = sum_prod - inv_Lf
    den = jnp.sqrt((sum_x2 - inv_Lf) * (sum_y2 - inv_Lf))
    cc = num / (den + EPS)                               # per-row, cheap

    # total loss = -0.1*mean(nss) + mean(kld) - 0.1*mean(cc); all three means
    # are over the same N rows, so accumulate the combined per-row term.
    contrib = -0.1 * nss + kld - 0.1 * cc                # (TM, 1)

    # Mask rows added by padding (padded rows are filled with 1.0 so all
    # intermediates above are finite; the mask removes their contribution).
    row_idx = i * tm + jax.lax.broadcasted_iota(jnp.int32, (tm, 1), 0)
    valid = row_idx < n_total
    partial = jnp.sum(jnp.where(valid, contrib, 0.0))

    # Independent per-block output (lane-dense (8,128) tile) -> grid axis can
    # be "parallel" and shard across TensorCores on v7x.
    out_ref[...] = jnp.zeros(out_ref.shape, jnp.float32) + partial


def make_spherical_weight(height, width):
    # weight[h, w] = sin(h / height * pi), matching the PyTorch __init__.
    col = jnp.sin(jnp.arange(height, dtype=jnp.float32) / height * jnp.pi)
    return jnp.tile(col.reshape(-1, 1), (1, width))      # (H, W)


def _vmem_limit_bytes():
    """Request ~3/4 of physical VMEM (capped at 96 MiB for v5e/v6e's 128 MiB;
    gives 48 MiB on v7x's 64 MiB per-core VMEM)."""
    phys = 64 * 1024 * 1024                              # conservative default
    try:
        phys = int(pltpu.get_tpu_info().vmem_capacity_bytes)
    except Exception:
        pass
    return min(phys * 3 // 4, 96 * 1024 * 1024)


def spherical_sal_loss(inp, sal, fix, weight_hw, max_tm=1024):
    """inp, sal, fix: (B, C, H, W) float arrays.  weight_hw: (H, W)."""
    B, C, H, W = inp.shape
    N = B * C
    L = H * W

    x2 = inp.reshape(N, L).astype(jnp.float32)
    s2 = sal.reshape(N, L).astype(jnp.float32)
    f2 = fix.reshape(N, L).astype(jnp.float32)
    w2 = weight_hw.reshape(1, L).astype(jnp.float32)

    # ---- tile-size selection from the per-generation VMEM budget ----
    vmem_limit = _vmem_limit_bytes()
    budget = int(vmem_limit * 0.6)        # headroom for compiler scratch
    # ~6 double-buffered input rows + ~12 live f32 temporaries per row.
    per_row_bytes = 18 * L * 4
    tm_cap = (budget // per_row_bytes) // 8 * 8
    tm_cap = max(8, min(int(max_tm), tm_cap))
    # TODO(synk): add an L-tiling grid axis (two-pass row statistics) for very
    # large H*W maps whose (8, L) f32 rows do not fit v7x's 64 MiB VMEM.

    n_pad8 = ((N + 7) // 8) * 8
    TM = min(tm_cap, n_pad8)
    TM = max(8, (TM // 8) * 8)
    N_pad = ((N + TM - 1) // TM) * TM
    G = N_pad // TM

    if N_pad != N:
        pad = ((0, N_pad - N), (0, 0))
        # Pad with 1.0 so padded rows stay finite through the normalizers;
        # their contributions are masked out inside the kernel.
        x2 = jnp.pad(x2, pad, constant_values=1.0)
        s2 = jnp.pad(s2, pad, constant_values=1.0)
        f2 = jnp.pad(f2, pad, constant_values=1.0)

    kernel = functools.partial(_loss_kernel, n_total=N, tm=TM, l_size=L)
    row_spec = pl.BlockSpec((TM, L), lambda i: (i, 0))

    partials = pl.pallas_call(
        kernel,
        out_shape=jax.ShapeDtypeStruct((G, 8, 128), jnp.float32),
        grid_spec=pltpu.PrefetchScalarGridSpec(
            num_scalar_prefetch=0,
            grid=(G,),
            in_specs=[row_spec, row_spec, row_spec,
                      pl.BlockSpec((1, L), lambda i: (0, 0))],
            out_specs=pl.BlockSpec((1, 8, 128), lambda i: (i, 0, 0)),
        ),
        compiler_params=pltpu.CompilerParams(
            dimension_semantics=("parallel",),      # independent output blocks
            vmem_limit_bytes=vmem_limit,
        ),
    )(x2, s2, f2, w2)

    return jnp.sum(partials[:, 0, 0]) / jnp.float32(N)


# ---------------- pure-JAX reference (faithful to the PyTorch module) ----------------
def _reference_loss(inp, sal, fix, weight_hw):
    B, C, H, W = inp.shape
    N, L = B * C, H * W
    w = weight_hw.reshape(1, L)
    x = inp.reshape(N, L) * w
    s = sal.reshape(N, L) * w
    f = fix.reshape(N, L) * w

    # NSS
    mean_x = x.mean(-1, keepdims=True)
    std_x = jnp.sqrt(((x - mean_x) ** 2).sum(-1, keepdims=True) / (L - 1))
    xn = (x - mean_x) / (std_x + EPS)
    nss = jnp.mean((xn * f).sum(-1) / (f.sum(-1) + EPS))

    xp = x / x.sum(-1, keepdims=True)
    sp = s / s.sum(-1, keepdims=True)

    kld = jnp.mean((sp * jnp.log(sp / (xp + EPS) + EPS)).sum(-1))

    sum_prod = (xp * sp).sum(-1)
    sum_x, sum_y = xp.sum(-1), sp.sum(-1)
    sum_x2, sum_y2 = (xp ** 2).sum(-1), (sp ** 2).sum(-1)
    num = sum_prod - sum_x * sum_y / L
    den = jnp.sqrt((sum_x2 - sum_x ** 2 / L) * (sum_y2 - sum_y ** 2 / L))
    cc = jnp.mean(num / (den + EPS))

    return -0.1 * nss + kld - 0.1 * cc


if __name__ == "__main__":
    key = jax.random.PRNGKey(0)

    # --- case 1: N a multiple of 8, single block ---
    B, C, H, W = 2, 4, 16, 16
    k1, k2, k3, key = jax.random.split(key, 4)
    inp = jax.random.uniform(k1, (B, C, H, W), jnp.float32, 0.05, 1.0)
    sal = jax.random.uniform(k2, (B, C, H, W), jnp.float32, 0.05, 1.0)
    fix = (jax.random.uniform(k3, (B, C, H, W)) > 0.7).astype(jnp.float32)
    weight_hw = make_spherical_weight(H, W)

    loss = spherical_sal_loss(inp, sal, fix, weight_hw)
    jax.block_until_ready(loss)
    ref = _reference_loss(inp, sal, fix, weight_hw)
    assert jnp.allclose(loss, ref, rtol=2e-5, atol=2e-5), (loss, ref)

    # --- case 2: N not a multiple of TM -> exercises padding/mask + multi-block parallel path ---
    B2, C2 = 3, 3
    k4, k5, k6, key = jax.random.split(key, 4)
    inp2 = jax.random.uniform(k4, (B2, C2, H, W), jnp.float32, 0.05, 1.0)
    sal2 = jax.random.uniform(k5, (B2, C2, H, W), jnp.float32, 0.05, 1.0)
    fix2 = (jax.random.uniform(k6, (B2, C2, H, W)) > 0.7).astype(jnp.float32)

    loss2 = spherical_sal_loss(inp2, sal2, fix2, weight_hw, max_tm=8)
    jax.block_until_ready(loss2)
    ref2 = _reference_loss(inp2, sal2, fix2, weight_hw)
    assert jnp.allclose(loss2, ref2, rtol=2e-5, atol=2e-5), (loss2, ref2)

    print("KERNEL_OK")
</pallas_src>

<mosaic_0001>
module attributes {stable_mosaic.version = 11 : i64} {
  func.func @_loss_kernel(%arg0: i32, %arg1: memref<8x256xf32, #tpu.memory_space<vmem>>, %arg2: memref<8x256xf32, #tpu.memory_space<vmem>>, %arg3: memref<8x256xf32, #tpu.memory_space<vmem>>, %arg4: memref<1x256xf32, #tpu.memory_space<vmem>>, %arg5: memref<1x8x128xf32, #tpu.memory_space<vmem>>) attributes {dimension_semantics = [#tpu.dimension_semantics<parallel>], iteration_bounds = array<i64: 1>, scalar_prefetch = 0 : i64, scratch_operands = 0 : i64, tpu.core_type = #tpu.core_type<tc>, window_params = [{transform_indices = @transform_0, window_bounds = array<i64: 8, 256>}, {transform_indices = @transform_1, window_bounds = array<i64: 8, 256>}, {transform_indices = @transform_2, window_bounds = array<i64: 8, 256>}, {pipeline_mode = #tpu.pipeline_mode<synchronous>, transform_indices = @transform_3, window_bounds = array<i64: 1, 256>}, {transform_indices = @transform_4, window_bounds = array<i64: 1, 8, 128>}]} {
    %c0 = arith.constant 0 : index
    %c0_0 = arith.constant 0 : index
    %0 = vector.load %arg4[%c0, %c0_0] : memref<1x256xf32, #tpu.memory_space<vmem>>, vector<1x256xf32>
    %c0_1 = arith.constant 0 : index
    %c0_2 = arith.constant 0 : index
    %1 = vector.load %arg1[%c0_1, %c0_2] : memref<8x256xf32, #tpu.memory_space<vmem>>, vector<8x256xf32>
    %2 = vector.broadcast %0 : vector<1x256xf32> to vector<8x256xf32>
    %3 = arith.mulf %1, %2 : vector<8x256xf32>
    %c0_3 = arith.constant 0 : index
    %c0_4 = arith.constant 0 : index
    %4 = vector.load %arg2[%c0_3, %c0_4] : memref<8x256xf32, #tpu.memory_space<vmem>>, vector<8x256xf32>
    %5 = vector.broadcast %0 : vector<1x256xf32> to vector<8x256xf32>
    %6 = arith.mulf %4, %5 : vector<8x256xf32>
    %c0_5 = arith.constant 0 : index
    %c0_6 = arith.constant 0 : index
    %7 = vector.load %arg3[%c0_5, %c0_6] : memref<8x256xf32, #tpu.memory_space<vmem>>, vector<8x256xf32>
    %8 = vector.broadcast %0 : vector<1x256xf32> to vector<8x256xf32>
    %9 = arith.mulf %7, %8 : vector<8x256xf32>
    %cst = arith.constant dense<0.000000e+00> : vector<8xf32>
    %10 = vector.multi_reduction <add>, %3, %cst [1] : vector<8x256xf32> to vector<8xf32>
    %11 = vector.shape_cast %10 : vector<8xf32> to vector<8x1xf32>
    %cst_7 = arith.constant dense<0.000000e+00> : vector<8xf32>
    %12 = vector.multi_reduction <add>, %6, %cst_7 [1] : vector<8x256xf32> to vector<8xf32>
    %13 = vector.shape_cast %12 : vector<8xf32> to vector<8x1xf32>
    %cst_8 = arith.constant dense<0.000000e+00> : vector<8xf32>
    %14 = vector.multi_reduction <add>, %9, %cst_8 [1] : vector<8x256xf32> to vector<8xf32>
    %15 = vector.shape_cast %14 : vector<8xf32> to vector<8x1xf32>
    %cst_9 = arith.constant 3.906250e-03 : f32
    %16 = vector.broadcast %cst_9 : f32 to vector<8x1xf32>
    %17 = arith.mulf %11, %16 : vector<8x1xf32>
    %18 = vector.broadcast %17 : vector<8x1xf32> to vector<8x256xf32>
    %19 = arith.subf %3, %18 : vector<8x256xf32>
    %20 = arith.mulf %19, %19 : vector<8x256xf32>
    %cst_10 = arith.constant dense<0.000000e+00> : vector<8xf32>
    %21 = vector.multi_reduction <add>, %20, %cst_10 [1] : vector<8x256xf32> to vector<8xf32>
    %22 = vector.shape_cast %21 : vector<8xf32> to vector<8x1xf32>
    %cst_11 = arith.constant 0.00392156886 : f32
    %23 = vector.broadcast %cst_11 : f32 to vector<8x1xf32>
    %24 = arith.mulf %22, %23 : vector<8x1xf32>
    %25 = math.sqrt %24 : vector<8x1xf32>
    %cst_12 = arith.constant 1.000000e-07 : f32
    %26 = vector.broadcast %cst_12 : f32 to vector<8x1xf32>
    %27 = arith.addf %25, %26 : vector<8x1xf32>
    %cst_13 = arith.constant 1.000000e+00 : f32
    %28 = vector.broadcast %cst_13 : f32 to vector<8x1xf32>
    %29 = arith.divf %28, %27 : vector<8x1xf32>
    %cst_14 = arith.constant 1.000000e-07 : f32
    %30 = vector.broadcast %cst_14 : f32 to vector<8x1xf32>
    %31 = arith.addf %15, %30 : vector<8x1xf32>
    %cst_15 = arith.constant 1.000000e+00 : f32
    %32 = vector.broadcast %cst_15 : f32 to vector<8x1xf32>
    %33 = arith.divf %32, %31 : vector<8x1xf32>
    %34 = arith.mulf %19, %9 : vector<8x256xf32>
    %cst_16 = arith.constant dense<0.000000e+00> : vector<8xf32>
    %35 = vector.multi_reduction <add>, %34, %cst_16 [1] : vector<8x256xf32> to vector<8xf32>
    %36 = vector.shape_cast %35 : vector<8xf32> to vector<8x1xf32>
    %37 = arith.mulf %36, %29 : vector<8x1xf32>
    %38 = arith.mulf %37, %33 : vector<8x1xf32>
    %cst_17 = arith.constant 1.000000e+00 : f32
    %39 = vector.broadcast %cst_17 : f32 to vector<8x1xf32>
    %40 = arith.divf %39, %11 : vector<8x1xf32>
    %cst_18 = arith.constant 1.000000e+00 : f32
    %41 = vector.broadcast %cst_18 : f32 to vector<8x1xf32>
    %42 = arith.divf %41, %13 : vector<8x1xf32>
    %43 = vector.broadcast %40 : vector<8x1xf32> to vector<8x256xf32>
    %44 = arith.mulf %3, %43 : vector<8x256xf32>
    %45 = vector.broadcast %42 : vector<8x1xf32> to vector<8x256xf32>
    %46 = arith.mulf %6, %45 : vector<8x256xf32>
    %cst_19 = arith.constant 1.000000e-07 : f32
    %47 = vector.broadcast %cst_19 : f32 to vector<8x256xf32>
    %48 = arith.addf %44, %47 : vector<8x256xf32>
    %49 = arith.divf %46, %48 : vector<8x256xf32>
    %cst_20 = arith.constant 1.000000e-07 : f32
    %50 = vector.broadcast %cst_20 : f32 to vector<8x256xf32>
    %51 = arith.addf %49, %50 : vector<8x256xf32>
    %52 = math.log %51 : vector<8x256xf32>
    %53 = arith.mulf %46, %52 : vector<8x256xf32>
    %cst_21 = arith.constant dense<0.000000e+00> : vector<8xf32>
    %54 = vector.multi_reduction <add>, %53, %cst_21 [1] : vector<8x256xf32> to vector<8xf32>
    %55 = vector.shape_cast %54 : vector<8xf32> to vector<8x1xf32>
    %56 = arith.mulf %44, %46 : vector<8x256xf32>
    %cst_22 = arith.constant dense<0.000000e+00> : vector<8xf32>
    %57 = vector.multi_reduction <add>, %56, %cst_22 [1] : vector<8x256xf32> to vector<8xf32>
    %58 = vector.shape_cast %57 : vector<8xf32> to vector<8x1xf32>
    %59 = arith.mulf %44, %44 : vector<8x256xf32>
    %cst_23 = arith.constant dense<0.000000e+00> : vector<8xf32>
    %60 = vector.multi_reduction <add>, %59, %cst_23 [1] : vector<8x256xf32> to vector<8xf32>
    %61 = vector.shape_cast %60 : vector<8xf32> to vector<8x1xf32>
    %62 = arith.mulf %46, %46 : vector<8x256xf32>
    %cst_24 = arith.constant dense<0.000000e+00> : vector<8xf32>
    %63 = vector.multi_reduction <add>, %62, %cst_24 [1] : vector<8x256xf32> to vector<8xf32>
    %64 = vector.shape_cast %63 : vector<8xf32> to vector<8x1xf32>
    %cst_25 = arith.constant 3.906250e-03 : f32
    %65 = vector.broadcast %cst_25 : f32 to vector<8x1xf32>
    %66 = arith.subf %58, %65 : vector<8x1xf32>
    %cst_26 = arith.constant 3.906250e-03 : f32
    %67 = vector.broadcast %cst_26 : f32 to vector<8x1xf32>
    %68 = arith.subf %61, %67 : vector<8x1xf32>
    %cst_27 = arith.constant 3.906250e-03 : f32
    %69 = vector.broadcast %cst_27 : f32 to vector<8x1xf32>
    %70 = arith.subf %64, %69 : vector<8x1xf32>
    %71 = arith.mulf %68, %70 : vector<8x1xf32>
    %72 = math.sqrt %71 : vector<8x1xf32>
    %cst_28 = arith.constant 1.000000e-07 : f32
    %73 = vector.broadcast %cst_28 : f32 to vector<8x1xf32>
    %74 = arith.addf %72, %73 : vector<8x1xf32>
    %75 = arith.divf %66, %74 : vector<8x1xf32>
    %cst_29 = arith.constant -1.000000e-01 : f32
    %76 = vector.broadcast %cst_29 : f32 to vector<8x1xf32>
    %77 = arith.mulf %76, %38 : vector<8x1xf32>
    %78 = arith.addf %77, %55 : vector<8x1xf32>
    %cst_30 = arith.constant 1.000000e-01 : f32
    %79 = vector.broadcast %cst_30 : f32 to vector<8x1xf32>
    %80 = arith.mulf %79, %75 : vector<8x1xf32>
    %81 = arith.subf %78, %80 : vector<8x1xf32>
    %c8_i32 = arith.constant 8 : i32
    %82 = arith.muli %arg0, %c8_i32 : i32
    %83 = tpu.iota {dimensions = array<i32: 0>} : vector<8x1xi32>
    %84 = vector.broadcast %82 : i32 to vector<8x1xi32>
    %85 = arith.addi %84, %83 : vector<8x1xi32>
    %c8_i32_31 = arith.constant 8 : i32
    %86 = vector.broadcast %c8_i32_31 : i32 to vector<8x1xi32>
    %87 = arith.cmpi slt, %85, %86 : vector<8x1xi32>
    %cst_32 = arith.constant 0.000000e+00 : f32
    %88 = vector.broadcast %cst_32 : f32 to vector<8x1xf32>
    %89 = arith.select %87, %81, %88 : vector<8x1xi1>, vector<8x1xf32>
    %90 = vector.shape_cast %89 : vector<8x1xf32> to vector<1x8x1xf32>
    %cst_33 = arith.constant dense<0.000000e+00> : vector<1xf32>
    %91 = vector.multi_reduction <add>, %90, %cst_33 [1, 2] : vector<1x8x1xf32> to vector<1xf32>
    %92 = vector.shape_cast %91 : vector<1xf32> to vector<1x1x1xf32>
    %93 = vector.extract %92[0, 0, 0] : f32 from vector<1x1x1xf32>
    %cst_34 = arith.constant 0.000000e+00 : f32
    %94 = vector.broadcast %cst_34 : f32 to vector<1x8x128xf32>
    %95 = vector.broadcast %93 : f32 to vector<1x8x128xf32>
    %96 = arith.addf %94, %95 : vector<1x8x128xf32>
    %c0_35 = arith.constant 0 : index
    %c0_36 = arith.constant 0 : index
    %c0_37 = arith.constant 0 : index
    %97 = vector.load %arg5[%c0_35, %c0_36, %c0_37] : memref<1x8x128xf32, #tpu.memory_space<vmem>>, vector<1x8x128xf32>
    tpu.vector_store %arg5[%c0_35, %c0_36, %c0_37], %96 {strides = array<i32>} : memref<1x8x128xf32, #tpu.memory_space<vmem>>, vector<1x8x128xf32>,
    return
  }
  func.func @transform_0(%arg0: i32) -> (i32, i32) {
    %c0_i32 = arith.constant 0 : i32
    %c0_i32_0 = arith.constant 0 : i32
    return %arg0, %c0_i32 : i32, i32
  }
  func.func @transform_1(%arg0: i32) -> (i32, i32) {
    %c0_i32 = arith.constant 0 : i32
    %c0_i32_0 = arith.constant 0 : i32
    return %arg0, %c0_i32 : i32, i32
  }
  func.func @transform_2(%arg0: i32) -> (i32, i32) {
    %c0_i32 = arith.constant 0 : i32
    %c0_i32_0 = arith.constant 0 : i32
    return %arg0, %c0_i32 : i32, i32
  }
  func.func @transform_3(%arg0: i32) -> (i32, i32) {
    %c0_i32 = arith.constant 0 : i32
    %c0_i32_0 = arith.constant 0 : i32
    %c0_i32_1 = arith.constant 0 : i32
    return %c0_i32, %c0_i32_0 : i32, i32
  }
  func.func @transform_4(%arg0: i32) -> (i32, i32, i32) {
    %c0_i32 = arith.constant 0 : i32
    %c0_i32_0 = arith.constant 0 : i32
    %c0_i32_1 = arith.constant 0 : i32
    return %arg0, %c0_i32, %c0_i32_0 : i32, i32, i32
  }
}

</mosaic_0001>

<bundles_post_ra>
// kernel: tpu_custom_call.1
= control target key start
LH: loop header
LB: loop body
LE: loop exit
PB: predicated region body
PF: predicated region fallthrough
CT: control target
= control target key end

     0   :  { %9 = vsyncpa [#allocation3], 0  ;;  %s415_s0 = inlined_call_operand.hbm [shape: f32[8,256], index: 0, kind: input, shape index: {}]   ;;  %s416_s1 = inlined_call_operand.hbm [shape: f32[8,256], index: 1, kind: input, shape index: {}]   ;;  %s417_s2 = inlined_call_operand.hbm [shape: f32[8,256], index: 2, kind: input, shape index: {}]   ;;  %s418_s3 = inlined_call_operand.vmem [shape: f32[1,256], index: 3, kind: input, shape index: {}]   ;;  %s419_s4 = inlined_call_operand.hbm [shape: f32[1,8,128], index: 4, kind: output, shape index: {}]  }
   0x1   :  { %10 = vsyncpa [#allocation6], 0 }
   0x2   :  { %11 = vsyncpa [#allocation4], 0  ;;  %s335_s15 = smov [#allocation5]   ;;  %s336_s17 = smov [#allocation2]  }
   0x3   :  { %s28_s16 = sshll.u32 %s335_s15, 4  ;;  %s18_s18 = sshll.u32 %s336_s17, 4  ;;  %s29_s16 = int_to_ptr.vmem [resolvable:$true] %s28_s16  ;;  %s19_s18 = int_to_ptr.vmem [resolvable:$true] %s18_s18 }
   0x4   :  { %s241_s21 = scalar_lea.hbm %s416_s1, 256 }
   0x5   :  { %p242_p0 = scmp.ne.s32.totalorder %s416_s1, %s241_s21  ;;  %p245_p1 = scmp.lt.u32.totalorder %s241_s21, %s416_s1 }
   0x7   :  { %p247_p2 = pnand %p245_p1, %p242_p0 }
   0x9   :  { %250 = shalt.err (!%p247_p2)
}
   0xa   :  { %s251_s26 = scalar_lea.vmem %s29_s16, 256  ;;  %p256_p4 = scmp.lt.s32.totalorder %s29_s16, %s29_s16 }
   0xb   :  { %p252_p3 = scmp.ne.s32.totalorder %s29_s16, %s251_s26  ;;  %p257_p5 = scmp.lt.s32.totalorder %s251_s26, %s251_s26 }
   0xd   :  { %p258_p6 = por %p257_p5, %p256_p4 }
   0xf   :  { %p259_p7 = pnand %p258_p6, %p252_p3 }
  0x11   :  { %262 = shalt.err (!%p259_p7)
}
  0x12   :  { %31 = dma.hbm_to_vmem [thread:$0]  %s416_s1, 256, %s29_s16, [#allocation6]  }
  0x13   :  { %s263_s5 = scalar_lea.hbm %s415_s0, 256 }
  0x14   :  { %p264_p8 = scmp.ne.s32.totalorder %s415_s0, %s263_s5  ;;  %p267_p9 = scmp.lt.u32.totalorder %s263_s5, %s415_s0 }
  0x16   :  { %p269_p10 = pnand %p267_p9, %p264_p8 }
  0x18   :  { %272 = shalt.err (!%p269_p10)
}
  0x19   :  { %s273_s10 = scalar_lea.vmem %s19_s18, 256  ;;  %p278_p12 = scmp.lt.s32.totalorder %s19_s18, %s19_s18 }
  0x1a   :  { %p274_p11 = scmp.ne.s32.totalorder %s19_s18, %s273_s10  ;;  %p279_p13 = scmp.lt.s32.totalorder %s273_s10, %s273_s10 }
  0x1c   :  { %p280_p0 = por %p279_p13, %p278_p12 }
  0x1e   :  { %p281_p1 = pnand %p280_p0, %p274_p11 }
  0x20   :  { %284 = shalt.err (!%p281_p1)
}
  0x21   :  { %21 = dma.hbm_to_vmem [thread:$0]  %s415_s0, 256, %s19_s18, [#allocation3]  }
  0x22   :  { %s337_s12 = smov [#allocation7]   ;;  %s285_s16 = scalar_lea.hbm %s417_s2, 256 }
  0x23   :  { %s38_s13 = sshll.u32 %s337_s12, 4  ;;  %p286_p2 = scmp.ne.s32.totalorder %s417_s2, %s285_s16  ;;  %s39_s13 = int_to_ptr.vmem [resolvable:$true] %s38_s13 }
  0x24   :  { %p289_p3 = scmp.lt.u32.totalorder %s285_s16, %s417_s2 }
  0x26   :  { %p291_p4 = pnand %p289_p3, %p286_p2 }
  0x28   :  { %294 = shalt.err (!%p291_p4)
}
  0x29   :  { %s295_s22 = scalar_lea.vmem %s39_s13, 256  ;;  %p300_p6 = scmp.lt.s32.totalorder %s39_s13, %s39_s13 }
  0x2a   :  { %p296_p5 = scmp.ne.s32.totalorder %s39_s13, %s295_s22  ;;  %p301_p7 = scmp.lt.s32.totalorder %s295_s22, %s295_s22 }
  0x2c   :  { %p302_p8 = por %p301_p7, %p300_p6 }
  0x2e   :  { %p303_p9 = pnand %p302_p8, %p296_p5 }
  0x30   :  { %306 = shalt.err (!%p303_p9)
}
  0x31   :  { %41 = dma.hbm_to_vmem [thread:$0]  %s417_s2, 256, %s39_s13, [#allocation6]  }
  0x32   :  { %329 = dma.done.wait [#allocation3], 256  }
  0x33   :  { %330 = vsyncadd [#allocation3], 4294967040 }
  0x34   :  { %331 = dma.done.wait [#allocation6], 512  }
  0x35   :  { %332 = vsyncadd [#allocation6], 4294966784  ;;  %v57_v0 = vlaneseq  ;;  %v53_v4 = vld [vmem:[%s418_s3] sm:$0x3]  ;;  %v55_v6 = vld [vmem:[#allocation2 + $0x8] sm:$0xff]  ;;  %vm180_vm4 = vcmask 7168  }
  0x36   :  { %v54_v5 = vld [vmem:[#allocation2] sm:$0xff]  ;;  %v69_v9 = vld [vmem:[#allocation5] sm:$0xff]  ;;  %v70_v10 = vld [vmem:[#allocation5 + $0x8] sm:$0xff]  ;;  %s338_s2 = smov [#allocation8]  }
  0x37   :  { %v58_v1 = vshrl.u32 %v57_v0, 7  ;;  %v73_v17 = vld [vmem:[#allocation7] sm:$0xff]  ;;  %v74_v18 = vld [vmem:[#allocation7 + $0x8] sm:$0xff]  ;;  %s200_s3 = sshll.u32 %s338_s2, 4  ;;  %s201_s3 = int_to_ptr.vmem [resolvable:$true] %s200_s3 }
  0x38   :  { %s307_s26 = scalar_lea.vmem %s201_s3, 128  ;;  %p312_p11 = scmp.lt.s32.totalorder %s201_s3, %s201_s3 }
  0x39   :  { %v59_v2 = vsub.s32 0, %v58_v1  ;;  %v63_v3 = vsub.s32 1, %v58_v1  ;;  %p308_p10 = scmp.ne.s32.totalorder %s201_s3, %s307_s26  ;;  %p313_p12 = scmp.lt.s32.totalorder %s307_s26, %s307_s26 }
  0x3b   :  { %v60_v7 = vrot.slane %v53_v4, %v59_v2  ;;  %v64_v8 = vrot.slane %v53_v4, %v63_v3  ;;  %p314_p13 = por %p313_p12, %p312_p11 }
  0x3d   :  { %v67_v11 = vmul.f32 %v60_v7, %v54_v5  ;;  %v68_v12 = vmul.f32 %v64_v8, %v55_v6  ;;  %v71_v13 = vmul.f32 %v69_v9, %v60_v7  ;;  %v72_v14 = vmul.f32 %v70_v10, %v64_v8  ;;  %p315_p0 = pnand %p314_p13, %p308_p10 }
  0x3e   :  { %v75_v19 = vmul.f32 %v73_v17, %v60_v7  ;;  %v76_v20 = vmul.f32 %v74_v18, %v64_v8 }
  0x3f   :  { %v77_v15 = vadd.f32 %v68_v12, %v67_v11  ;;  %v80_v16 = vadd.f32 %v72_v14, %v71_v13 }
  0x40   :  { %v83_v21 = vadd.f32 %v76_v20, %v75_v19 }
  0x41   :  { %78 = vadd.xlane.f32.xlu0 %v77_v15 }
  0x45   :  { %81 = vadd.xlane.f32.xlu0 %v80_v16 }
  0xce   :  { %v79_v22 = vpop.xlane.xlu0 %78 }
  0xcf   :  { %v86_v23 = vmul.f32 0.00390625, %v79_v22  ;;  %219 = vrcp.f32 %v79_v22 }
  0xd1   :  { %v87_v24 = vsub.f32 %v67_v11, %v86_v23  ;;  %v88_v25 = vsub.f32 %v68_v12, %v86_v23 }
  0xd2   :  { %v82_v26 = vpop.xlane.xlu0 %81 }
  0xd3   :  { %221 = vrcp.f32 %v82_v26  ;;  %v89_v27 = vmul.f32 %v87_v24, %v87_v24  ;;  %v90_v28 = vmul.f32 %v88_v25, %v88_v25  ;;  %v108_v29 = vmul.f32 %v87_v24, %v75_v19 }
  0xd4   :  { %v109_v30 = vmul.f32 %v88_v25, %v76_v20 }
  0xd5   :  { %v91_v31 = vadd.f32 %v90_v28, %v89_v27 }
  0xd6   :  { %v110_v32 = vadd.f32 %v109_v30, %v108_v29 }
  0xd7   :  { %92 = vadd.xlane.f32.xlu1 %v91_v31 }
  0xd9   :  { %v220_v33 = vpop.eup %219 }
  0xda   :  { %v119_v34 = vmul.f32 %v220_v33, %v67_v11  ;;  %v120_v35 = vmul.f32 %v220_v33, %v68_v12 }
  0xdc   :  { %v124_v36 = vadd.f32 1e-07, %v120_v35  ;;  %v145_v37 = vmul.f32 %v119_v34, %v119_v34  ;;  %v146_v38 = vmul.f32 %v120_v35, %v120_v35  ;;  %v123_v39 = vadd.f32 1e-07, %v119_v34 }
  0xdd   :  { %v222_v40 = vpop.eup %221 }
  0xde   :  { %223 = vrcp.f32 %v124_v36  ;;  %v147_v41 = vadd.f32 %v146_v38, %v145_v37  ;;  %v121_v42 = vmul.f32 %v222_v40, %v71_v13  ;;  %v122_v43 = vmul.f32 %v222_v40, %v72_v14 }
  0xdf   :  { %225 = vrcp.f32 %v123_v39 }
  0xe0   :  { %148 = vadd.xlane.f32.xlu1 %v147_v41  ;;  %v150_v44 = vmul.f32 %v121_v42, %v121_v42  ;;  %v151_v45 = vmul.f32 %v122_v43, %v122_v43  ;;  %v140_v47 = vmul.f32 %v121_v42, %v119_v34  ;;  %v141_v48 = vmul.f32 %v122_v43, %v120_v35 }
  0xe2   :  { %v152_v46 = vadd.f32 %v151_v45, %v150_v44  ;;  %v142_v49 = vadd.f32 %v141_v48, %v140_v47 }
  0xe4   :  { %84 = vadd.xlane.f32.xlu1 %v83_v21  ;;  %153 = vadd.xlane.f32.xlu0 %v152_v46 }
  0xe8   :  { %v224_v50 = vpop.eup %223  ;;  %111 = vadd.xlane.f32.xlu0 %v110_v32  ;;  %143 = vadd.xlane.f32.xlu1 %v142_v49 }
  0xe9   :  { %v226_v51 = vpop.eup %225  ;;  %v128_v52 = vmul.f32 %v224_v50, %v122_v43 }
  0xea   :  { %v126_v53 = vmul.f32 %v226_v51, %v121_v42 }
  0xeb   :  { %v130_v54 = vadd.f32 1e-07, %v128_v52 }
  0xec   :  { %v129_v55 = vadd.f32 1e-07, %v126_v53 }
  0xed   :  { %227 = vlog2.f32 %v130_v54 }
  0xee   :  { %229 = vlog2.f32 %v129_v55 }
  0xf7   :  { %v228_v56 = vpop.eup %227 }
  0xf8   :  { %v230_v57 = vpop.eup %229  ;;  %v134_v58 = vmul.f32 0.6931472, %v228_v56 }
  0xf9   :  { %v132_v59 = vmul.f32 0.6931472, %v230_v57 }
  0xfa   :  { %v136_v60 = vmul.f32 %v134_v58, %v122_v43 }
  0xfb   :  { %v135_v61 = vmul.f32 %v132_v59, %v121_v42 }
  0xfd   :  { %v137_v62 = vadd.f32 %v136_v60, %v135_v61 }
  0xff   :  { %138 = vadd.xlane.f32.xlu0 %v137_v62 }
 0x164   :  { %v93_v63 = vpop.xlane.xlu1 %92 }
 0x165   :  { %v94_v0 = vmul.f32 0.003921569, %v93_v63 }
 0x167   :  { %231 = vrsqrt.f32 %v94_v0  ;;  %vm97_vm0 = vcmp.eq.f32.partialorder %v94_v0, inf  ;;  %v100_v9 = vand.u32 2147483648, %v94_v0  ;;  %vm99_vm1 = vcmp.eq.f32.partialorder %v94_v0, 0.0 }
 0x16d   :  { %v149_v1 = vpop.xlane.xlu1 %148 }
 0x16e   :  { %v211_v5 = vadd.f32 -0.00390625, %v149_v1 }
 0x171   :  { %v232_v2 = vpop.eup %231  ;;  %v154_v3 = vpop.xlane.xlu0 %153 }
 0x172   :  { %v96_v4 = vmul.f32 %v232_v2, %v94_v0  ;;  %v212_v6 = vadd.f32 -0.00390625, %v154_v3  ;;  %v85_v12 = vpop.xlane.xlu1 %84 }
 0x173   :  { %v105_v13 = vadd.f32 1e-07, %v85_v12 }
 0x174   :  { %v158_v7 = vmul.f32 %v212_v6, %v211_v5  ;;  %v98_v8 = vsel %vm97_vm0, %v94_v0, %v96_v4 }
 0x175   :  { %v101_v10 = vsel %vm99_vm1, %v100_v9, %v98_v8  ;;  %v112_v21 = vpop.xlane.xlu0 %111 }
 0x176   :  { %233 = vrsqrt.f32 %v158_v7  ;;  %v102_v11 = vadd.f32 1e-07, %v101_v10  ;;  %vm161_vm2 = vcmp.eq.f32.partialorder %v158_v7, inf  ;;  %v164_v16 = vand.u32 2147483648, %v158_v7  ;;  %v144_v24 = vpop.xlane.xlu1 %143 }
 0x177   :  { %vm163_vm3 = vcmp.eq.f32.partialorder %v158_v7, 0.0  ;;  %v210_v26 = vadd.f32 -0.00390625, %v144_v24 }
 0x178   :  { %235 = vrcp.f32 %v102_v11 }
 0x179   :  { %237 = vrcp.f32 %v105_v13 }
 0x180   :  { %v234_v14 = vpop.eup %233 }
 0x181   :  { %v160_v15 = vmul.f32 %v234_v14, %v158_v7 }
 0x182   :  { %v236_v20 = vpop.eup %235 }
 0x183   :  { %v162_v17 = vsel %vm161_vm2, %v158_v7, %v160_v15  ;;  %v113_v22 = vmul.f32 %v236_v20, %v112_v21  ;;  %v238_v23 = vpop.eup %237 }
 0x184   :  { %v165_v18 = vsel %vm163_vm3, %v164_v16, %v162_v17 }
 0x185   :  { %v166_v19 = vadd.f32 1e-07, %v165_v18  ;;  %v114_v25 = vmul.f32 %v238_v23, %v113_v22 }
 0x187   :  { %239 = vrcp.f32 %v166_v19  ;;  %v169_v30 = vmul.f32 -0.1, %v114_v25 }
 0x18c   :  { %v139_v28 = vpop.xlane.xlu0 %138 }
 0x18d   :  { %v170_v32 = vadd.f32 %v169_v30, %v139_v28 }
 0x191   :  { %v240_v27 = vpop.eup %239 }
 0x192   :  { %v168_v29 = vmul.f32 %v240_v27, %v210_v26 }
 0x194   :  { %v171_v31 = vmul.f32 0.1, %v168_v29 }
 0x196   :  { %v172_v33 = vsub.f32 %v170_v32, %v171_v31 }
 0x198   :  { %v181_v34 = vsel %vm180_vm4, %v172_v33, 0.0 }
 0x199   :  { %182 = vadd.xlane.f32.xlu1 %v181_v34 }
 0x226   :  { %v183_v35 = vpop.xlane.xlu1 %182 }
 0x227   :  { %v184_v36 = vrot.slane %v183_v35, 4 }
 0x229   :  { %v185_v37 = vadd.f32 %v184_v36, %v183_v35 }
 0x22b   :  { %v186_v38 = vrot.slane %v185_v37, 2 }
 0x22d   :  { %v187_v39 = vadd.f32 %v186_v38, %v185_v37 }
 0x22f   :  { %v188_v40 = vrot.slane %v187_v39, 1 }
 0x231   :  { %v189_v41 = vadd.f32 %v188_v40, %v187_v39 }
 0x233   :  { %213 = vpush %v189_v41 }
 0x264   :  { %s214_s25 = spop %213 }
 0x265   :  { %v191_v42 = vstv %s214_s25 }
 0x266   :  { %193 = vst [vmem:[#allocation8] sm:$0xff] %v191_v42 }
 0x267   :  { %318 = shalt.err (!%p315_p0)
}
 0x268   :  { %s319_s29 = scalar_lea.hbm %s419_s4, 128 }
 0x269   :  { %p320_p1 = scmp.ne.s32.totalorder %s419_s4, %s319_s29  ;;  %p323_p2 = scmp.lt.u32.totalorder %s319_s29, %s419_s4 }
 0x26b   :  { %p325_p3 = pnand %p323_p2, %p320_p1 }
 0x26d   :  { %328 = shalt.err (!%p325_p3)
}
 0x26e   :  { %203 = dma.vmem_to_hbm [thread:$0]  %s201_s3, 128, %s419_s4, [#allocation4]  }
 0x26f   :  { %333 = dma.done.wait [#allocation4], 128  }
 0x270   :  { %334 = vsyncadd [#allocation4], 4294967168 }
 0x271   :  { %207 = vsyncpa [#allocation3], 1 }
 0x272   :  { %208 = vsyncpa [#allocation6], 1 }
 0x273   :  { %209 = vsyncpa [#allocation4], 1 }

</bundles_post_ra>
